<compile_context>
chip_gen: v5e
topology: v5e:2x2
jax: 0.10.0
libtpu: 0.0.40
codegen_flags: <defaults>
</compile_context>

<pallas_src>
import jax
import jax.numpy as jnp
from jax.experimental import pallas as pl
from jax.experimental.pallas import tpu as pltpu

# ----- problem sizes (small, consistent with an image-classification task) --
N, C_IN, H, W = 2, 4, 16, 16
C_OUT = 8
NUM_CLASSES = 10
KH, KW = 3, 3

NHW = N * H * W                 # 512 -> lane axis inside the kernel
K9C = KH * KW * C_IN            # 36  -> contraction dim of the conv matmul
LANES = 128                     # lane-padded class dim for the output store


def _external_model_kernel(xT_ref, wT_ref, cb_ref, pool_ref, fw_ref, fb_ref,
                           o_ref):
    """Whole forward for all N images in a single invocation.

    xT_ref  : (K9C, NHW)     im2col'd input, batch*spatial on the lane axis
    wT_ref  : (C_OUT, K9C)   conv weights, reshaped + transposed
    cb_ref  : (C_OUT, 1)     conv bias (broadcast over lanes)
    pool_ref: (NHW, N)       block pooling matrix (1/(H*W) per image block)
    fw_ref  : (C_OUT, LANES) fc weights, zero-padded to 128 classes
    fb_ref  : (1, LANES)     fc bias, zero-padded
    o_ref   : (N, LANES)     lane-padded logits
    """
    # Conv as ONE matmul; acc is [C_OUT, NHW] = 8 sublanes x 512 lanes (dense).
    acc = jnp.dot(wT_ref[...], xT_ref[...], preferred_element_type=jnp.float32)
    acc = jnp.maximum(acc + cb_ref[...], 0.0)                       # bias + ReLU
    # Per-image global average pool as a matmul: [C_OUT, NHW] x [NHW, N].
    pooled = jnp.dot(acc, pool_ref[...], preferred_element_type=jnp.float32)
    # FC: contract C_OUT of pooled (axis 0) with C_OUT of fw (axis 0)
    # -> [N, LANES], a single lane-dense output block.
    logits = jax.lax.dot_general(
        pooled, fw_ref[...],
        dimension_numbers=(((0,), (0,)), ((), ())),
        preferred_element_type=jnp.float32) + fb_ref[...]
    o_ref[...] = logits.astype(o_ref.dtype)


def external_module_forward(x_nchw, conv_w, conv_b, fc_w, fc_b):
    """ExternalModule.forward(x): delegates to the wrapped model's forward."""
    # --- wrapper-side glue (plain JAX): layout, padding, im2col --------------
    x_nhwc = jnp.transpose(x_nchw, (0, 2, 3, 1)).astype(jnp.float32)   # N,H,W,C
    x_pad = jnp.pad(x_nhwc, ((0, 0), (1, 1), (1, 1), (0, 0)))          # N,H+2,W+2,C
    # im2col: tap order (dy, dx, c_in) matches conv_w.reshape(K9C, C_OUT).
    taps = [x_pad[:, dy:dy + H, dx:dx + W, :]
            for dy in range(KH) for dx in range(KW)]                   # each N,H,W,C
    x_cols = jnp.stack(taps, axis=3).reshape(NHW, K9C)                 # [512, 36]
    x_colsT = x_cols.T                                                 # [36, 512]

    w2dT = conv_w.astype(jnp.float32).reshape(K9C, C_OUT).T            # [8, 36]
    cb = conv_b.astype(jnp.float32).reshape(C_OUT, 1)                  # [8, 1]
    # Block pooling matrix: pool[n*H*W + i, n] = 1/(H*W).
    pool = (jnp.kron(jnp.eye(N, dtype=jnp.float32),
                     jnp.ones((H * W, 1), jnp.float32)) / (H * W))     # [512, 2]
    fw_pad = jnp.zeros((C_OUT, LANES), jnp.float32).at[:, :NUM_CLASSES].set(
        fc_w.astype(jnp.float32))                                      # [8, 128]
    fb_pad = jnp.zeros((1, LANES), jnp.float32).at[:, :NUM_CLASSES].set(
        fc_b.astype(jnp.float32).reshape(1, NUM_CLASSES))              # [1, 128]

    out_pad = pl.pallas_call(
        _external_model_kernel,
        out_shape=jax.ShapeDtypeStruct((N, LANES), jnp.float32),
        grid=(1,),                                   # single invocation, no batch grid
        in_specs=[
            pl.BlockSpec((K9C, NHW), lambda i: (0, 0)),
            pl.BlockSpec((C_OUT, K9C), lambda i: (0, 0)),
            pl.BlockSpec((C_OUT, 1), lambda i: (0, 0)),
            pl.BlockSpec((NHW, N), lambda i: (0, 0)),
            pl.BlockSpec((C_OUT, LANES), lambda i: (0, 0)),
            pl.BlockSpec((1, LANES), lambda i: (0, 0)),
        ],
        out_specs=pl.BlockSpec((N, LANES), lambda i: (0, 0)),
        compiler_params=pltpu.CompilerParams(
            dimension_semantics=("arbitrary",),
        ),
    )(x_colsT, w2dT, cb, pool, fw_pad, fb_pad)
    return out_pad[:, :NUM_CLASSES]


if __name__ == "__main__":
    key = jax.random.PRNGKey(0)
    k_x, k_cw, k_cb, k_fw, k_fb = jax.random.split(key, 5)

    # deterministic synthetic parameters (shapes implied by the wrapped model)
    x = jax.random.normal(k_x, (N, C_IN, H, W), dtype=jnp.float32)            # NCHW
    conv_w = 0.1 * jax.random.normal(k_cw, (KH, KW, C_IN, C_OUT), jnp.float32)  # HWIO
    conv_b = 0.01 * jax.random.normal(k_cb, (C_OUT,), jnp.float32)
    fc_w = 0.1 * jax.random.normal(k_fw, (C_OUT, NUM_CLASSES), jnp.float32)
    fc_b = 0.01 * jax.random.normal(k_fb, (NUM_CLASSES,), jnp.float32)

    logits = external_module_forward(x, conv_w, conv_b, fc_w, fc_b)
    jax.block_until_ready(logits)

    # lightweight sanity check against a pure-JAX reference of the same model
    x_nhwc = jnp.transpose(x, (0, 2, 3, 1))
    ref_conv = jax.lax.conv_general_dilated(
        x_nhwc, conv_w, window_strides=(1, 1), padding="SAME",
        dimension_numbers=("NHWC", "HWIO", "NHWC"),
        precision=jax.lax.Precision.HIGHEST,
    ) + conv_b
    ref_pool = jnp.mean(jnp.maximum(ref_conv, 0.0), axis=(1, 2))              # (N, C_OUT)
    ref_logits = jnp.dot(ref_pool, fc_w,
                         precision=jax.lax.Precision.HIGHEST) + fc_b
    assert logits.shape == (N, NUM_CLASSES)
    assert jnp.allclose(logits, ref_logits, atol=1e-4, rtol=1e-4)

    print("KERNEL_OK")
</pallas_src>

<mosaic_0001>
module attributes {stable_mosaic.version = 11 : i64} {
  func.func @_external_model_kernel(%arg0: i32, %arg1: memref<36x512xf32, #tpu.memory_space<vmem>>, %arg2: memref<8x36xf32, #tpu.memory_space<vmem>>, %arg3: memref<8x1xf32, #tpu.memory_space<vmem>>, %arg4: memref<512x2xf32, #tpu.memory_space<vmem>>, %arg5: memref<8x128xf32, #tpu.memory_space<vmem>>, %arg6: memref<1x128xf32, #tpu.memory_space<vmem>>, %arg7: memref<2x128xf32, #tpu.memory_space<vmem>>) attributes {dimension_semantics = [#tpu.dimension_semantics<arbitrary>], iteration_bounds = array<i64: 1>, scalar_prefetch = 0 : i64, scratch_operands = 0 : i64, tpu.core_type = #tpu.core_type<tc>, window_params = [{pipeline_mode = #tpu.pipeline_mode<synchronous>, transform_indices = @transform_0, window_bounds = array<i64: 36, 512>}, {pipeline_mode = #tpu.pipeline_mode<synchronous>, transform_indices = @transform_1, window_bounds = array<i64: 8, 36>}, {pipeline_mode = #tpu.pipeline_mode<synchronous>, transform_indices = @transform_2, window_bounds = array<i64: 8, 1>}, {pipeline_mode = #tpu.pipeline_mode<synchronous>, transform_indices = @transform_3, window_bounds = array<i64: 512, 2>}, {pipeline_mode = #tpu.pipeline_mode<synchronous>, transform_indices = @transform_4, window_bounds = array<i64: 8, 128>}, {pipeline_mode = #tpu.pipeline_mode<synchronous>, transform_indices = @transform_5, window_bounds = array<i64: 1, 128>}, {pipeline_mode = #tpu.pipeline_mode<synchronous>, transform_indices = @transform_6, window_bounds = array<i64: 2, 128>}]} {
    %c0 = arith.constant 0 : index
    %c0_0 = arith.constant 0 : index
    %0 = vector.load %arg2[%c0, %c0_0] : memref<8x36xf32, #tpu.memory_space<vmem>>, vector<8x36xf32>
    %c0_1 = arith.constant 0 : index
    %c0_2 = arith.constant 0 : index
    %1 = vector.load %arg1[%c0_1, %c0_2] : memref<36x512xf32, #tpu.memory_space<vmem>>, vector<36x512xf32>
    %cst = arith.constant dense<0.000000e+00> : vector<8x512xf32>
    %2 = tpu.matmul %0, %1, %cst {dimension_numbers = #tpu.dot_dimension_numbers<[1], [0], [0], [1], [0, 0, 1, 1], [], []>} : vector<8x36xf32>, vector<36x512xf32>, vector<8x512xf32> -> vector<8x512xf32>
    %c0_3 = arith.constant 0 : index
    %c0_4 = arith.constant 0 : index
    %3 = vector.load %arg3[%c0_3, %c0_4] : memref<8x1xf32, #tpu.memory_space<vmem>>, vector<8x1xf32>
    %4 = vector.broadcast %3 : vector<8x1xf32> to vector<8x512xf32>
    %5 = arith.addf %2, %4 : vector<8x512xf32>
    %cst_5 = arith.constant 0.000000e+00 : f32
    %6 = vector.broadcast %cst_5 : f32 to vector<8x512xf32>
    %7 = arith.maximumf %5, %6 : vector<8x512xf32>
    %c0_6 = arith.constant 0 : index
    %c0_7 = arith.constant 0 : index
    %8 = vector.load %arg4[%c0_6, %c0_7] : memref<512x2xf32, #tpu.memory_space<vmem>>, vector<512x2xf32>
    %cst_8 = arith.constant dense<0.000000e+00> : vector<8x2xf32>
    %9 = tpu.matmul %7, %8, %cst_8 {dimension_numbers = #tpu.dot_dimension_numbers<[1], [0], [0], [1], [0, 0, 1, 1], [], []>} : vector<8x512xf32>, vector<512x2xf32>, vector<8x2xf32> -> vector<8x2xf32>
    %c0_9 = arith.constant 0 : index
    %c0_10 = arith.constant 0 : index
    %10 = vector.load %arg5[%c0_9, %c0_10] : memref<8x128xf32, #tpu.memory_space<vmem>>, vector<8x128xf32>
    %cst_11 = arith.constant dense<0.000000e+00> : vector<2x128xf32>
    %11 = tpu.matmul %9, %10, %cst_11 {dimension_numbers = #tpu.dot_dimension_numbers<[0], [0], [1], [1], [0, 1, 1, 1], [], []>} : vector<8x2xf32>, vector<8x128xf32>, vector<2x128xf32> -> vector<2x128xf32>
    %c0_12 = arith.constant 0 : index
    %c0_13 = arith.constant 0 : index
    %12 = vector.load %arg6[%c0_12, %c0_13] : memref<1x128xf32, #tpu.memory_space<vmem>>, vector<1x128xf32>
    %13 = vector.broadcast %12 : vector<1x128xf32> to vector<2x128xf32>
    %14 = arith.addf %11, %13 : vector<2x128xf32>
    %c0_14 = arith.constant 0 : index
    %c0_15 = arith.constant 0 : index
    %15 = vector.load %arg7[%c0_14, %c0_15] : memref<2x128xf32, #tpu.memory_space<vmem>>, vector<2x128xf32>
    tpu.vector_store %arg7[%c0_14, %c0_15], %14 {strides = array<i32>} : memref<2x128xf32, #tpu.memory_space<vmem>>, vector<2x128xf32>,
    return
  }
  func.func @transform_0(%arg0: i32) -> (i32, i32) {
    %c0_i32 = arith.constant 0 : i32
    %c0_i32_0 = arith.constant 0 : i32
    %c0_i32_1 = arith.constant 0 : i32
    return %c0_i32, %c0_i32_0 : i32, i32
  }
  func.func @transform_1(%arg0: i32) -> (i32, i32) {
    %c0_i32 = arith.constant 0 : i32
    %c0_i32_0 = arith.constant 0 : i32
    %c0_i32_1 = arith.constant 0 : i32
    return %c0_i32, %c0_i32_0 : i32, i32
  }
  func.func @transform_2(%arg0: i32) -> (i32, i32) {
    %c0_i32 = arith.constant 0 : i32
    %c0_i32_0 = arith.constant 0 : i32
    %c0_i32_1 = arith.constant 0 : i32
    return %c0_i32, %c0_i32_0 : i32, i32
  }
  func.func @transform_3(%arg0: i32) -> (i32, i32) {
    %c0_i32 = arith.constant 0 : i32
    %c0_i32_0 = arith.constant 0 : i32
    %c0_i32_1 = arith.constant 0 : i32
    return %c0_i32, %c0_i32_0 : i32, i32
  }
  func.func @transform_4(%arg0: i32) -> (i32, i32) {
    %c0_i32 = arith.constant 0 : i32
    %c0_i32_0 = arith.constant 0 : i32
    %c0_i32_1 = arith.constant 0 : i32
    return %c0_i32, %c0_i32_0 : i32, i32
  }
  func.func @transform_5(%arg0: i32) -> (i32, i32) {
    %c0_i32 = arith.constant 0 : i32
    %c0_i32_0 = arith.constant 0 : i32
    %c0_i32_1 = arith.constant 0 : i32
    return %c0_i32, %c0_i32_0 : i32, i32
  }
  func.func @transform_6(%arg0: i32) -> (i32, i32) {
    %c0_i32 = arith.constant 0 : i32
    %c0_i32_0 = arith.constant 0 : i32
    %c0_i32_1 = arith.constant 0 : i32
    return %c0_i32, %c0_i32_0 : i32, i32
  }
}

</mosaic_0001>

<bundles_post_ra>
// kernel: tpu_custom_call.1
= control target key start
LH: loop header
LB: loop body
LE: loop exit
PB: predicated region body
PF: predicated region fallthrough
CT: control target
= control target key end

     0   :  { %vm55_vm0 = vcmask 1043456   ;;  %v414_v8 = vmov 0   ;;  %vm51_vm1 = vcmask 293888   ;;  %s726_s0 = inlined_call_operand.vmem [shape: f32[36,512], index: 0, kind: input, shape index: {}]   ;;  %s727_s1 = inlined_call_operand.vmem [shape: f32[8,36], index: 1, kind: input, shape index: {}]   ;;  %s728_s2 = inlined_call_operand.vmem [shape: f32[8,1], index: 2, kind: input, shape index: {}]   ;;  %s729_s3 = inlined_call_operand.vmem [shape: f32[512,2], index: 3, kind: input, shape index: {}]   ;;  %s730_s4 = inlined_call_operand.vmem [shape: f32[8,128], index: 4, kind: input, shape index: {}]   ;;  %s731_s5 = inlined_call_operand.vmem [shape: f32[1,128], index: 5, kind: input, shape index: {}]   ;;  %s732_s6 = inlined_call_operand.hbm [shape: f32[2,128], index: 6, kind: output, shape index: {}]  }
   0x1   :  { %v43_v0 = vld [vmem:[%s726_s0 + $0x90] sm:$0xf]  ;;  %v44_v1 = vld [vmem:[%s726_s0 + $0x98] sm:$0xf]  ;;  %v41_v6 = vld [vmem:[%s726_s0 + $0x80] sm:$0xf]  ;;  %386 = vset.pattern.permute.xlu0 %v414_v8 }
   0x2   :  { %v39_v2 = vld [vmem:[%s726_s0 + $0x70] sm:$0xff]  ;;  %378 = vmatpush.msk.msra.mxu2 %vm55_vm0, %v43_v0  ;;  %380 = vmatpush.msk.msra.mxu3 %vm55_vm0, %v44_v1  ;;  %v40_v3 = vld [vmem:[%s726_s0 + $0x78] sm:$0xff]  ;;  %v42_v7 = vld [vmem:[%s726_s0 + $0x88] sm:$0xf] }
   0x3   :  { %v35_v4 = vld [vmem:[%s726_s0 + $0x50] sm:$0xff]  ;;  %v36_v5 = vld [vmem:[%s726_s0 + $0x58] sm:$0xff]  ;;  %v37_v9 = vld [vmem:[%s726_s0 + $0x60] sm:$0xff]  ;;  %374 = vmatpush.msk.msra.mxu0 %vm55_vm0, %v41_v6  ;;  %376 = vmatpush.msk.msra.mxu1 %vm55_vm0, %v42_v7 }
   0x4   :  { %120 = vmatpush.msra.mxu2 %v39_v2  ;;  %140 = vmatpush.msra.mxu3 %v40_v3  ;;  %v38_v10 = vld [vmem:[%s726_s0 + $0x68] sm:$0xff]  ;;  %v31_v11 = vld [vmem:[%s726_s0 + $0x30] sm:$0xff]  ;;  %v32_v12 = vld [vmem:[%s726_s0 + $0x38] sm:$0xff] }
   0x5   :  { %v33_v13 = vld [vmem:[%s726_s0 + $0x40] sm:$0xff]  ;;  %v34_v14 = vld [vmem:[%s726_s0 + $0x48] sm:$0xff]  ;;  %80 = vmatpush.msra.mxu0 %v37_v9  ;;  %100 = vmatpush.msra.mxu1 %v38_v10  ;;  %v27_v15 = vld [vmem:[%s726_s0 + $0x10] sm:$0xff] }
   0x6   :  { %121 = vmatpush.msra.mxu2 %v35_v4  ;;  %141 = vmatpush.msra.mxu3 %v36_v5  ;;  %v28_v16 = vld [vmem:[%s726_s0 + $0x18] sm:$0xff]  ;;  %v24_v17 = vld [vmem:[%s727_s1] sm:$0xff]  ;;  %v30_v19 = vld [vmem:[%s726_s0 + $0x28] sm:$0xff] }
   0x7   :  { %81 = vmatpush.msra.mxu0 %v33_v13  ;;  %101 = vmatpush.msra.mxu1 %v34_v14  ;;  %v29_v18 = vld [vmem:[%s726_s0 + $0x20] sm:$0xff]  ;;  %v199_v21 = vld [vmem:[%s729_s3 + $0x178] sm:$0xff]  ;;  %v26_v23 = vld [vmem:[%s726_s0 + $0x8] sm:$0xff] }
   0x8   :  { %122 = vmatpush.msra.mxu2 %v31_v11  ;;  %142 = vmatpush.msra.mxu3 %v32_v12  ;;  %v45_v20 = vld [vmem:[%s728_s2] sm:$0xff]  ;;  %v167_v24 = vld [vmem:[%s729_s3 + $0x78] sm:$0xff]  ;;  %v198_v27 = vld [vmem:[%s729_s3 + $0x170] sm:$0xff] }
   0x9   :  { %v25_v22 = vld [vmem:[%s726_s0] sm:$0xff]  ;;  %82 = vmatpush.msra.mxu0 %v29_v18  ;;  %102 = vmatpush.msra.mxu1 %v30_v19  ;;  %v183_v25 = vld [vmem:[%s729_s3 + $0xf8] sm:$0xff]  ;;  %v166_v28 = vld [vmem:[%s729_s3 + $0x70] sm:$0xff] }
   0xa   :  { %123 = vmatpush.msra.mxu2 %v27_v15  ;;  %143 = vmatpush.msra.mxu3 %v28_v16  ;;  %v215_v26 = vld [vmem:[%s729_s3 + $0x1f8] sm:$0xff]  ;;  %v182_v29 = vld [vmem:[%s729_s3 + $0xf0] sm:$0xff]  ;;  %v197_v31 = vld [vmem:[%s729_s3 + $0x168] sm:$0xff] }
   0xb   :  { %379 = vmatmul.msk.f32.vlgmr.msra.gmra.mxu2 %vm51_vm1, %v24_v17  ;;  %381 = vmatmul.msk.f32.vlgmr.msra.gmra.mxu3 %vm51_vm1, %v24_v17  ;;  %v214_v30 = vld [vmem:[%s729_s3 + $0x1f0] sm:$0xff]  ;;  %v165_v32 = vld [vmem:[%s729_s3 + $0x68] sm:$0xff]  ;;  %v196_v35 = vld [vmem:[%s729_s3 + $0x160] sm:$0xff] }
   0xc   :  { %48 = vperm.xlu0 %386, %v45_v20   ;;  %256 = vmatpush.msrb.mxu2 %v199_v21  ;;  %v181_v33 = vld [vmem:[%s729_s3 + $0xe8] sm:$0xff]  ;;  %v164_v36 = vld [vmem:[%s729_s3 + $0x60] sm:$0xff]  ;;  %v195_v39 = vld [vmem:[%s729_s3 + $0x158] sm:$0xff] }
   0xd   :  { %83 = vmatpush.msra.mxu0 %v25_v22  ;;  %103 = vmatpush.msra.mxu1 %v26_v23  ;;  %v213_v34 = vld [vmem:[%s729_s3 + $0x1e8] sm:$0xff]  ;;  %v180_v37 = vld [vmem:[%s729_s3 + $0xe0] sm:$0xff]  ;;  %v163_v40 = vld [vmem:[%s729_s3 + $0x58] sm:$0xff] }
   0xe   :  { %375 = vmatmul.msk.f32.vlgmr.msra.gmra.mxu0 %vm51_vm1, %v24_v17  ;;  %377 = vmatmul.msk.f32.vlgmr.msra.gmra.mxu1 %vm51_vm1, %v24_v17  ;;  %v212_v38 = vld [vmem:[%s729_s3 + $0x1e0] sm:$0xff]  ;;  %v179_v41 = vld [vmem:[%s729_s3 + $0xd8] sm:$0xff]  ;;  %v194_v43 = vld [vmem:[%s729_s3 + $0x150] sm:$0xff] }
   0xf   :  { %216 = vmatpush.msrb.mxu0 %v167_v24  ;;  %236 = vmatpush.msrb.mxu1 %v183_v25  ;;  %v211_v42 = vld [vmem:[%s729_s3 + $0x1d8] sm:$0xff]  ;;  %v162_v44 = vld [vmem:[%s729_s3 + $0x50] sm:$0xff]  ;;  %v193_v47 = vld [vmem:[%s729_s3 + $0x148] sm:$0xff] }
  0x10   :  { %276 = vmatpush.msrb.mxu3 %v215_v26  ;;  %257 = vmatpush.msrb.mxu2 %v198_v27  ;;  %v178_v45 = vld [vmem:[%s729_s3 + $0xd0] sm:$0xff]  ;;  %v161_v48 = vld [vmem:[%s729_s3 + $0x48] sm:$0xff]  ;;  %v192_v51 = vld [vmem:[%s729_s3 + $0x140] sm:$0xff] }
  0x11   :  { %217 = vmatpush.msrb.mxu0 %v166_v28  ;;  %237 = vmatpush.msrb.mxu1 %v182_v29  ;;  %v210_v46 = vld [vmem:[%s729_s3 + $0x1d0] sm:$0xff]  ;;  %v177_v49 = vld [vmem:[%s729_s3 + $0xc8] sm:$0xff] }
  0x12   :  { %277 = vmatpush.msrb.mxu3 %v214_v30  ;;  %258 = vmatpush.msrb.mxu2 %v197_v31  ;;  %v209_v50 = vld [vmem:[%s729_s3 + $0x1c8] sm:$0xff] }
  0x13   :  { %218 = vmatpush.msrb.mxu0 %v165_v32  ;;  %238 = vmatpush.msrb.mxu1 %v181_v33 }
  0x14   :  { %278 = vmatpush.msrb.mxu3 %v213_v34  ;;  %259 = vmatpush.msrb.mxu2 %v196_v35 }
  0x15   :  { %219 = vmatpush.msrb.mxu0 %v164_v36  ;;  %239 = vmatpush.msrb.mxu1 %v180_v37 }
  0x16   :  { %279 = vmatpush.msrb.mxu3 %v212_v38  ;;  %260 = vmatpush.msrb.mxu2 %v195_v39 }
  0x17   :  { %220 = vmatpush.msrb.mxu0 %v163_v40  ;;  %240 = vmatpush.msrb.mxu1 %v179_v41 }
  0x18   :  { %280 = vmatpush.msrb.mxu3 %v211_v42  ;;  %261 = vmatpush.msrb.mxu2 %v194_v43 }
  0x19   :  { %221 = vmatpush.msrb.mxu0 %v162_v44  ;;  %241 = vmatpush.msrb.mxu1 %v178_v45 }
  0x1a   :  { %11 = vsyncpa [#allocation3], 0  ;;  %281 = vmatpush.msrb.mxu3 %v210_v46  ;;  %262 = vmatpush.msrb.mxu2 %v193_v47  ;;  %v160_v52 = vld [vmem:[%s729_s3 + $0x40] sm:$0xff]  ;;  %v191_v55 = vld [vmem:[%s729_s3 + $0x138] sm:$0xff]  ;;  %vm333_vm2 = vcmask 64512   ;;  %s415_s13 = smov [#allocation2]  }
  0x1b   :  { %v176_v53 = vld [vmem:[%s729_s3 + $0xc0] sm:$0xff]  ;;  %222 = vmatpush.msrb.mxu0 %v161_v48  ;;  %242 = vmatpush.msrb.mxu1 %v177_v49  ;;  %v159_v56 = vld [vmem:[%s729_s3 + $0x38] sm:$0xff]  ;;  %v190_v59 = vld [vmem:[%s729_s3 + $0x130] sm:$0xff]  ;;  %s363_s14 = sshll.u32 %s415_s13, 4  ;;  %s365_s15 = sshll.u32 %s732_s6, 4  ;;  %s364_s14 = int_to_ptr.vmem [resolvable:$true] %s363_s14  ;;  %s366_s15 = int_to_ptr.hbm [resolvable:$true] %s365_s15 }
  0x1c   :  { %v208_v54 = vld [vmem:[%s729_s3 + $0x1c0] sm:$0xff]  ;;  %282 = vmatpush.msrb.mxu3 %v209_v50  ;;  %263 = vmatpush.msrb.mxu2 %v192_v51  ;;  %v175_v57 = vld [vmem:[%s729_s3 + $0xb8] sm:$0xff]  ;;  %v158_v60 = vld [vmem:[%s729_s3 + $0x30] sm:$0xff] }
  0x1d   :  { %223 = vmatpush.msrb.mxu0 %v160_v52  ;;  %243 = vmatpush.msrb.mxu1 %v176_v53  ;;  %v207_v58 = vld [vmem:[%s729_s3 + $0x1b8] sm:$0xff]  ;;  %v174_v61 = vld [vmem:[%s729_s3 + $0xb0] sm:$0xff]  ;;  %v189_v63 = vld [vmem:[%s729_s3 + $0x128] sm:$0xff] }
  0x1e   :  { %283 = vmatpush.msrb.mxu3 %v208_v54  ;;  %264 = vmatpush.msrb.mxu2 %v191_v55  ;;  %v206_v62 = vld [vmem:[%s729_s3 + $0x1b0] sm:$0xff]  ;;  %v157_v0 = vld [vmem:[%s729_s3 + $0x28] sm:$0xff]  ;;  %v188_v3 = vld [vmem:[%s729_s3 + $0x120] sm:$0xff] }
  0x1f   :  { %224 = vmatpush.msrb.mxu0 %v159_v56  ;;  %244 = vmatpush.msrb.mxu1 %v175_v57  ;;  %v173_v1 = vld [vmem:[%s729_s3 + $0xa8] sm:$0xff]  ;;  %v156_v4 = vld [vmem:[%s729_s3 + $0x20] sm:$0xff]  ;;  %v187_v7 = vld [vmem:[%s729_s3 + $0x118] sm:$0xff] }
  0x20   :  { %284 = vmatpush.msrb.mxu3 %v207_v58  ;;  %265 = vmatpush.msrb.mxu2 %v190_v59  ;;  %v205_v2 = vld [vmem:[%s729_s3 + $0x1a8] sm:$0xff]  ;;  %v172_v5 = vld [vmem:[%s729_s3 + $0xa0] sm:$0xff]  ;;  %v155_v8 = vld [vmem:[%s729_s3 + $0x18] sm:$0xff] }
  0x21   :  { %225 = vmatpush.msrb.mxu0 %v158_v60  ;;  %245 = vmatpush.msrb.mxu1 %v174_v61  ;;  %v204_v6 = vld [vmem:[%s729_s3 + $0x1a0] sm:$0xff]  ;;  %v171_v9 = vld [vmem:[%s729_s3 + $0x98] sm:$0xff]  ;;  %v154_v11 = vld [vmem:[%s729_s3 + $0x10] sm:$0xff] }
  0x22   :  { %285 = vmatpush.msrb.mxu3 %v206_v62  ;;  %266 = vmatpush.msrb.mxu2 %v189_v63  ;;  %v203_v10 = vld [vmem:[%s729_s3 + $0x198] sm:$0xff]  ;;  %v170_v12 = vld [vmem:[%s729_s3 + $0x90] sm:$0xff]  ;;  %v153_v15 = vld [vmem:[%s729_s3 + $0x8] sm:$0xff] }
  0x23   :  { %226 = vmatpush.msrb.mxu0 %v157_v0  ;;  %246 = vmatpush.msrb.mxu1 %v173_v1  ;;  %v186_v13 = vld [vmem:[%s729_s3 + $0x110] sm:$0xff]  ;;  %v169_v16 = vld [vmem:[%s729_s3 + $0x88] sm:$0xff]  ;;  %v152_v19 = vld [vmem:[%s729_s3] sm:$0xff] }
  0x24   :  { %286 = vmatpush.msrb.mxu3 %v205_v2  ;;  %267 = vmatpush.msrb.mxu2 %v188_v3  ;;  %v202_v14 = vld [vmem:[%s729_s3 + $0x190] sm:$0xff]  ;;  %v185_v17 = vld [vmem:[%s729_s3 + $0x108] sm:$0xff]  ;;  %v168_v20 = vld [vmem:[%s729_s3 + $0x80] sm:$0xff] }
  0x25   :  { %227 = vmatpush.msrb.mxu0 %v156_v4  ;;  %247 = vmatpush.msrb.mxu1 %v172_v5  ;;  %v201_v18 = vld [vmem:[%s729_s3 + $0x188] sm:$0xff]  ;;  %v184_v21 = vld [vmem:[%s729_s3 + $0x100] sm:$0xff] }
  0x26   :  { %287 = vmatpush.msrb.mxu3 %v204_v6  ;;  %268 = vmatpush.msrb.mxu2 %v187_v7  ;;  %v200_v22 = vld [vmem:[%s729_s3 + $0x180] sm:$0xff] }
  0x27   :  { %228 = vmatpush.msrb.mxu0 %v155_v8  ;;  %248 = vmatpush.msrb.mxu1 %v171_v9  ;;  %v296_v36 = vld [vmem:[%s730_s4] sm:$0xff] }
  0x28   :  { %288 = vmatpush.msrb.mxu3 %v203_v10  ;;  %269 = vmatpush.msrb.mxu2 %v186_v13  ;;  %v387_v45 = vld [vmem:[%s731_s5] ss:$0 sm:$0xff] }
  0x29   :  { %229 = vmatpush.msrb.mxu0 %v154_v11  ;;  %249 = vmatpush.msrb.mxu1 %v170_v12 }
  0x2a   :  { %289 = vmatpush.msrb.mxu3 %v202_v14  ;;  %270 = vmatpush.msrb.mxu2 %v185_v17 }
  0x2b   :  { %230 = vmatpush.msrb.mxu0 %v153_v15  ;;  %250 = vmatpush.msrb.mxu1 %v169_v16 }
  0x2c   :  { %290 = vmatpush.msrb.mxu3 %v201_v18  ;;  %271 = vmatpush.msrb.mxu2 %v184_v21 }
  0x2d   :  { %231 = vmatpush.msrb.mxu0 %v152_v19  ;;  %251 = vmatpush.msrb.mxu1 %v168_v20 }
  0x2e   :  { %291 = vmatpush.msrb.mxu3 %v200_v22 }
  0x2f   :  { %352 = vmatpush.msra.mxu0 %v296_v36 }
  0x7e   :  { %v49_v23 = vpop.permute.xlu0 %48 }
  0x8b   :  { %v85_v24 = vpop.f32.mrf.mxu0  ;;  %v105_v25 = vpop.f32.mrf.mxu1 }
  0x8c   :  { %v86_v26 = vadd.f32 %v85_v24, %v49_v23  ;;  %v106_v27 = vadd.f32 %v105_v25, %v49_v23 }
  0x8e   :  { %v125_v28 = vpop.f32.mrf.mxu2  ;;  %v145_v29 = vpop.f32.mrf.mxu3  ;;  %v148_v30 = vmax.f32 %v86_v26, 0.0  ;;  %v149_v31 = vmax.f32 %v106_v27, 0.0 }
  0x8f   :  { %v126_v32 = vadd.f32 %v125_v28, %v49_v23  ;;  %v146_v33 = vadd.f32 %v145_v29, %v49_v23 }
  0x90   :  { %232 = vmatmul.f32.vlgmr.msrb.gmra.mxu0 %v148_v30  ;;  %252 = vmatmul.f32.vlgmr.msrb.gmra.mxu1 %v149_v31 }
  0x91   :  { %v150_v34 = vmax.f32 %v126_v32, 0.0  ;;  %v151_v35 = vmax.f32 %v146_v33, 0.0 }
  0x93   :  { %272 = vmatmul.f32.vlgmr.msrb.gmra.mxu2 %v150_v34  ;;  %292 = vmatmul.f32.vlgmr.msrb.gmra.mxu3 %v151_v35 }
 0x10d   :  { %v233_v37 = vpop.f32.mrf.mxu0  ;;  %v253_v38 = vpop.f32.mrf.mxu1 }
 0x10e   :  { %v254_v39 = vadd.f32 %v253_v38, %v233_v37 }
 0x116   :  { %v273_v40 = vpop.f32.mrf.mxu2  ;;  %v293_v42 = vpop.f32.mrf.mxu3 }
 0x117   :  { %v274_v41 = vadd.f32 %v273_v40, %v254_v39 }
 0x119   :  { %v294_v43 = vadd.f32 %v293_v42, %v274_v41 }
 0x11b   :  { %301 = vxpose.xlu0.b32.start.end [1/1] (short) (narrow) %v294_v43, 8 }
 0x1bf   :  { %v317_v44 = vpop.trf.xlu0 }
 0x1c0   :  { %382 = vmatmul.msk.f32.vlgmr.msra.gmra.mxu0 %vm333_vm2, %v317_v44 }
 0x23d   :  { %v354_v46 = vpop.f32.mrf.mxu0 }
 0x23e   :  { %v355_v47 = vadd.f32 %v387_v45, %v354_v46 }
 0x240   :  { %357 = vst [vmem:[#allocation2] sm:$0x3] %v355_v47 }
 0x241   :  { %368 = dma.vmem_to_hbm [thread:$0]  %s364_s14, 32, %s366_s15, [#allocation3]  }
 0x242   :  { %412 = dma.done.wait [#allocation3], 32  }
 0x243   :  { %413 = vsyncadd [#allocation3], 4294967264 }
 0x244   :  { %373 = vsyncpa [#allocation3], 1 }

</bundles_post_ra>
